<compile_context>
chip_gen: v7x
topology: tpu7x:2x2x1
jax: 0.10.0
libtpu: 0.0.40
codegen_flags: <defaults>
</compile_context>

<pallas_src>
import jax
import jax.numpy as jnp
from jax import lax
from jax.experimental import pallas as pl
from jax.experimental.pallas import tpu as pltpu


# ----------------------------------------------------------------------------
# CRALayer Pallas kernels
# ----------------------------------------------------------------------------

_MAX_TILE_LANES = 2048  # lanes per spatial tile (multiple of 128); C*T*4B per block


def _round_up(x, m):
    return (x + m - 1) // m * m


def _cra_pool_kernel(x_ref, sum_ref):
    """Accumulate spatial sum per (batch, channel).

    x_ref:   (1, C, T)  native dtype
    sum_ref: (1, C, 1)  f32 accumulator, resident across the HW-tile grid axis.
    """
    @pl.when(pl.program_id(1) == 0)
    def _():
        sum_ref[...] = jnp.zeros_like(sum_ref)

    sum_ref[...] += jnp.sum(x_ref[...], axis=2, keepdims=True, dtype=jnp.float32)


def _cra_apply_kernel(x_ref, att_ref, o_ref):
    """Streaming multiply: out = x * att (att broadcast over the spatial axis).

    x_ref/o_ref: (1, C, T) native dtype
    att_ref:     (1, C, 1) native dtype (already cast down in the wrapper)
    """
    o_ref[...] = x_ref[...] * att_ref[...]


@jax.jit
def cra_layer(x, w_du0, w_du2, w_11):
    """CRALayer forward.

    x:     (B, C, H, W)
    w_du0: (C//r, C, 1, 1)   conv_du[0] weight (bias=False)
    w_du2: (C, C//r, 1, 1)   conv_du[2] weight (bias=False)
    w_11:  (C, C, 1, 1)      conv_1_1 weight  (bias=False)
    """
    B, C, H, W = x.shape
    HW = H * W
    Cr = w_du0.shape[0]
    itemsize = int(x.dtype.itemsize)

    w_du0 = w_du0.reshape(Cr, C)
    w_du2 = w_du2.reshape(C, Cr)
    w_11 = w_11.reshape(C, C)

    # Lane-dense spatial tiling: pad HW to a multiple of the tile T (T % 128 == 0).
    T = min(_round_up(HW, 128), _MAX_TILE_LANES)
    HW_pad = _round_up(HW, T)
    n_t = HW_pad // T

    x_flat = x.reshape(B, C, HW)
    if HW_pad != HW:
        # Zero padding: does not pollute the pooled sum (divide by true HW below).
        x_flat = jnp.pad(x_flat, ((0, 0), (0, 0), (0, HW_pad - HW)))

    # --- Pass 1: pooled spatial sum (f32 accumulation). ---
    sums = pl.pallas_call(
        _cra_pool_kernel,
        out_shape=jax.ShapeDtypeStruct((B, C, 1), jnp.float32),
        grid_spec=pltpu.PrefetchScalarGridSpec(
            num_scalar_prefetch=0,
            grid=(B, n_t),
            in_specs=[pl.BlockSpec((1, C, T), lambda b, t: (b, 0, t))],
            out_specs=pl.BlockSpec((1, C, 1), lambda b, t: (b, 0, 0)),
        ),
        compiler_params=pltpu.CompilerParams(
            dimension_semantics=("parallel", "arbitrary")),
        cost_estimate=pl.CostEstimate(
            flops=B * C * HW_pad,
            transcendentals=0,
            bytes_accessed=B * C * HW_pad * itemsize + B * C * 4),
    )(x_flat)

    pooled = sums[:, :, 0] / HW                               # (B, C) f32

    # --- Tiny channel-attention GEMMs, batched over B (plain JAX glue). ---
    y1 = jnp.maximum(pooled @ w_du0.T, 0.0)                   # (B, Cr)
    y2 = y1 @ w_du2.T                                         # (B, C)
    res = pooled @ w_11.T                                     # (B, C)
    att = jax.nn.sigmoid(y2 + res).astype(x.dtype)            # (B, C) native dtype
    att = att[:, :, None]                                     # (B, C, 1)

    # --- Pass 2: streaming multiply with lane-dense output tiles. ---
    out_flat = pl.pallas_call(
        _cra_apply_kernel,
        out_shape=jax.ShapeDtypeStruct((B, C, HW_pad), x.dtype),
        grid_spec=pltpu.PrefetchScalarGridSpec(
            num_scalar_prefetch=0,
            grid=(B, n_t),
            in_specs=[
                pl.BlockSpec((1, C, T), lambda b, t: (b, 0, t)),
                pl.BlockSpec((1, C, 1), lambda b, t: (b, 0, 0)),
            ],
            out_specs=pl.BlockSpec((1, C, T), lambda b, t: (b, 0, t)),
        ),
        compiler_params=pltpu.CompilerParams(
            dimension_semantics=("parallel", "parallel")),
        cost_estimate=pl.CostEstimate(
            flops=B * C * HW_pad,
            transcendentals=0,
            bytes_accessed=2 * B * C * HW_pad * itemsize + B * C * itemsize),
    )(x_flat, att)

    if HW_pad != HW:
        out_flat = out_flat[:, :, :HW]
    return out_flat.reshape(B, C, H, W)


def cra_layer_ref(x, w_du0, w_du2, w_11):
    """Pure-JAX CRALayer reference."""
    B, C, H, W = x.shape
    Cr = w_du0.shape[0]
    pooled = jnp.mean(x, axis=(2, 3))                         # (B, C)
    y1 = jnp.maximum(pooled @ w_du0.reshape(Cr, C).T, 0.0)
    y2 = y1 @ w_du2.reshape(C, Cr).T
    res = pooled @ w_11.reshape(C, C).T
    att = jax.nn.sigmoid(y2 + res)
    return x * att[:, :, None, None]


# ----------------------------------------------------------------------------
# SAPNet forward (default config: use_dilation=True, use_DSC=False, use_split=False)
# ----------------------------------------------------------------------------

def conv2d(x, w, b=None, *, padding=1, dilation=1):
    out = lax.conv_general_dilated(
        x, w,
        window_strides=(1, 1),
        padding=((padding, padding), (padding, padding)),
        rhs_dilation=(dilation, dilation),
        dimension_numbers=("NCHW", "OIHW", "NCHW"),
    )
    if b is not None:
        out = out + b[None, :, None, None]
    return out


def init_sapnet_params(key, *, channel=32, reduction=16):
    scale = 0.05
    keys = iter(jax.random.split(key, 64))

    def conv_p(out_ch, in_ch, k=3):
        w = scale * jax.random.normal(next(keys), (out_ch, in_ch, k, k), jnp.float32)
        b = scale * jax.random.normal(next(keys), (out_ch,), jnp.float32)
        return {"w": w, "b": b}

    def cra_p(c, r):
        cr = c // r
        return (scale * jax.random.normal(next(keys), (cr, c, 1, 1), jnp.float32),
                scale * jax.random.normal(next(keys), (c, cr, 1, 1), jnp.float32),
                scale * jax.random.normal(next(keys), (c, c, 1, 1), jnp.float32))

    params = {
        "conv0": conv_p(channel, 6),
        "conv_i": conv_p(channel, 2 * channel),
        "conv_f": conv_p(channel, 2 * channel),
        "conv_g": conv_p(channel, 2 * channel),
        "conv_o": conv_p(channel, 2 * channel),
        "conv_out": conv_p(3, channel),
        "res_blocks": [
            {
                "conv_a": conv_p(channel, channel),
                "cra_a": cra_p(channel, reduction),
                "conv_b": conv_p(channel, channel),
                "cra_b": cra_p(channel, reduction),
            }
            for _ in range(5)
        ],
    }
    return params


def _res_block(blk, x, pad, dil, cra_fn):
    x = conv2d(x, blk["conv_a"]["w"], blk["conv_a"]["b"], padding=pad, dilation=dil)
    x = cra_fn(x, *blk["cra_a"])
    x = jax.nn.relu(x)
    x = conv2d(x, blk["conv_b"]["w"], blk["conv_b"]["b"], padding=pad, dilation=dil)
    x = cra_fn(x, *blk["cra_b"])
    x = jax.nn.relu(x)
    return x


def sapnet_forward(params, inp, *, iterations=6, use_dilation=True, cra_fn=cra_layer):
    B, _, H, W = inp.shape
    dilation = [1, 2, 4, 8, 16] if use_dilation else [1, 1, 1, 1, 1]
    padding = dilation

    x = inp
    h = jnp.zeros((B, 32, H, W), inp.dtype)
    c = jnp.zeros((B, 32, H, W), inp.dtype)
    x_list = []

    for _ in range(iterations):
        x = jnp.concatenate([inp, x], axis=1)
        x = jax.nn.relu(conv2d(x, params["conv0"]["w"], params["conv0"]["b"], padding=1))

        xh = jnp.concatenate([x, h], axis=1)
        i_g = jax.nn.sigmoid(conv2d(xh, params["conv_i"]["w"], params["conv_i"]["b"], padding=1))
        f_g = jax.nn.sigmoid(conv2d(xh, params["conv_f"]["w"], params["conv_f"]["b"], padding=1))
        g_g = jnp.tanh(conv2d(xh, params["conv_g"]["w"], params["conv_g"]["b"], padding=1))
        o_g = jax.nn.sigmoid(conv2d(xh, params["conv_o"]["w"], params["conv_o"]["b"], padding=1))
        c = f_g * c + i_g * g_g
        h = o_g * jnp.tanh(c)
        x = h

        for blk, pad, dil in zip(params["res_blocks"], padding, dilation):
            resx = x
            x = _res_block(blk, x, pad, dil, cra_fn)
            x = jax.nn.relu(x + resx)

        x = conv2d(x, params["conv_out"]["w"], params["conv_out"]["b"], padding=1)
        x = x + inp
        x_list.append(x)

    return x, x_list


# ----------------------------------------------------------------------------
# Self-test
# ----------------------------------------------------------------------------

if __name__ == "__main__":
    key = jax.random.PRNGKey(0)
    k_x, k_p, k_w = jax.random.split(key, 3)

    # --- CRALayer kernel unit checks (incl. a non-128-multiple H*W case). ---
    for (B, C, H, W) in [(2, 32, 16, 16), (2, 32, 14, 14)]:
        kk = jax.random.fold_in(k_w, H)
        k1, k2, k3, k4 = jax.random.split(kk, 4)
        xt = jax.random.normal(k1, (B, C, H, W), dtype=jnp.float32)
        w1 = 0.1 * jax.random.normal(k2, (C // 16, C, 1, 1), dtype=jnp.float32)
        w2 = 0.1 * jax.random.normal(k3, (C, C // 16, 1, 1), dtype=jnp.float32)
        w3 = 0.1 * jax.random.normal(k4, (C, C, 1, 1), dtype=jnp.float32)
        got = jax.block_until_ready(cra_layer(xt, w1, w2, w3))
        want = cra_layer_ref(xt, w1, w2, w3)
        assert jnp.allclose(got, want, atol=1e-5, rtol=1e-5), "CRALayer mismatch"

    # --- Full SAPNet forward (default 6 recurrent iterations). ---
    x = jax.random.normal(k_x, (2, 3, 16, 16), dtype=jnp.float32)
    params = init_sapnet_params(k_p)

    out, out_list = sapnet_forward(params, x, iterations=6, cra_fn=cra_layer)
    out = jax.block_until_ready(out)
    assert out.shape == x.shape and len(out_list) == 6

    ref_out, _ = sapnet_forward(params, x, iterations=6, cra_fn=cra_layer_ref)
    ref_out = jax.block_until_ready(ref_out)
    assert jnp.allclose(out, ref_out, atol=1e-3, rtol=1e-3), "SAPNet mismatch"

    print("KERNEL_OK")
</pallas_src>

<mosaic_0001>
module attributes {stable_mosaic.version = 11 : i64} {
  func.func @_cra_pool_kernel(%arg0: i32, %arg1: i32, %arg2: memref<1x32x256xf32, #tpu.memory_space<vmem>>, %arg3: memref<1x32x1xf32, #tpu.memory_space<vmem>>) attributes {dimension_semantics = [#tpu.dimension_semantics<parallel>, #tpu.dimension_semantics<arbitrary>], iteration_bounds = array<i64: 2, 1>, scalar_prefetch = 0 : i64, scratch_operands = 0 : i64, tpu.core_type = #tpu.core_type<tc>, window_params = [{transform_indices = @transform_0, window_bounds = array<i64: 1, 32, 256>}, {transform_indices = @transform_1, window_bounds = array<i64: 1, 32, 1>}]} {
    %c0_i32 = arith.constant 0 : i32
    %0 = arith.cmpi eq, %arg1, %c0_i32 : i32
    %1 = arith.extui %0 : i1 to i32
    %c0_i32_0 = arith.constant 0 : i32
    %2 = arith.cmpi ne, %1, %c0_i32_0 : i32
    scf.if %2 {
      %cst_9 = arith.constant 0.000000e+00 : f32
      %9 = vector.broadcast %cst_9 : f32 to vector<1x32x1xf32>
      %c0_10 = arith.constant 0 : index
      %c0_11 = arith.constant 0 : index
      %c0_12 = arith.constant 0 : index
      %10 = vector.load %arg3[%c0_10, %c0_11, %c0_12] : memref<1x32x1xf32, #tpu.memory_space<vmem>>, vector<1x32x1xf32>
      tpu.vector_store %arg3[%c0_10, %c0_11, %c0_12], %9 {strides = array<i32>} : memref<1x32x1xf32, #tpu.memory_space<vmem>>, vector<1x32x1xf32>,
    } else {
    }
    %c0 = arith.constant 0 : index
    %c0_1 = arith.constant 0 : index
    %c0_2 = arith.constant 0 : index
    %3 = vector.load %arg3[%c0, %c0_1, %c0_2] : memref<1x32x1xf32, #tpu.memory_space<vmem>>, vector<1x32x1xf32>
    %c0_3 = arith.constant 0 : index
    %c0_4 = arith.constant 0 : index
    %c0_5 = arith.constant 0 : index
    %4 = vector.load %arg2[%c0_3, %c0_4, %c0_5] : memref<1x32x256xf32, #tpu.memory_space<vmem>>, vector<1x32x256xf32>
    %cst = arith.constant dense<0.000000e+00> : vector<1x32xf32>
    %5 = vector.multi_reduction <add>, %4, %cst [2] : vector<1x32x256xf32> to vector<1x32xf32>
    %6 = vector.shape_cast %5 : vector<1x32xf32> to vector<1x32x1xf32>
    %7 = arith.addf %3, %6 : vector<1x32x1xf32>
    %c0_6 = arith.constant 0 : index
    %c0_7 = arith.constant 0 : index
    %c0_8 = arith.constant 0 : index
    %8 = vector.load %arg3[%c0_6, %c0_7, %c0_8] : memref<1x32x1xf32, #tpu.memory_space<vmem>>, vector<1x32x1xf32>
    tpu.vector_store %arg3[%c0_6, %c0_7, %c0_8], %7 {strides = array<i32>} : memref<1x32x1xf32, #tpu.memory_space<vmem>>, vector<1x32x1xf32>,
    return
  }
  func.func @transform_0(%arg0: i32, %arg1: i32) -> (i32, i32, i32) {
    %c0_i32 = arith.constant 0 : i32
    %c0_i32_0 = arith.constant 0 : i32
    return %arg0, %c0_i32, %arg1 : i32, i32, i32
  }
  func.func @transform_1(%arg0: i32, %arg1: i32) -> (i32, i32, i32) {
    %c0_i32 = arith.constant 0 : i32
    %c0_i32_0 = arith.constant 0 : i32
    %c0_i32_1 = arith.constant 0 : i32
    return %arg0, %c0_i32, %c0_i32_0 : i32, i32, i32
  }
}

module attributes {stable_mosaic.version = 11 : i64} {
  func.func @_cra_apply_kernel(%arg0: i32, %arg1: i32, %arg2: memref<1x32x256xf32, #tpu.memory_space<vmem>>, %arg3: memref<1x32x1xf32, #tpu.memory_space<vmem>>, %arg4: memref<1x32x256xf32, #tpu.memory_space<vmem>>) attributes {dimension_semantics = [#tpu.dimension_semantics<parallel>, #tpu.dimension_semantics<parallel>], iteration_bounds = array<i64: 2, 1>, scalar_prefetch = 0 : i64, scratch_operands = 0 : i64, tpu.core_type = #tpu.core_type<tc>, window_params = [{transform_indices = @transform_0, window_bounds = array<i64: 1, 32, 256>}, {transform_indices = @transform_1, window_bounds = array<i64: 1, 32, 1>}, {transform_indices = @transform_2, window_bounds = array<i64: 1, 32, 256>}]} {
    %c0 = arith.constant 0 : index
    %c0_0 = arith.constant 0 : index
    %c0_1 = arith.constant 0 : index
    %0 = vector.load %arg2[%c0, %c0_0, %c0_1] : memref<1x32x256xf32, #tpu.memory_space<vmem>>, vector<1x32x256xf32>
    %c0_2 = arith.constant 0 : index
    %c0_3 = arith.constant 0 : index
    %c0_4 = arith.constant 0 : index
    %1 = vector.load %arg3[%c0_2, %c0_3, %c0_4] : memref<1x32x1xf32, #tpu.memory_space<vmem>>, vector<1x32x1xf32>
    %2 = vector.broadcast %1 : vector<1x32x1xf32> to vector<1x32x256xf32>
    %3 = arith.mulf %0, %2 : vector<1x32x256xf32>
    %c0_5 = arith.constant 0 : index
    %c0_6 = arith.constant 0 : index
    %c0_7 = arith.constant 0 : index
    %4 = vector.load %arg4[%c0_5, %c0_6, %c0_7] : memref<1x32x256xf32, #tpu.memory_space<vmem>>, vector<1x32x256xf32>
    tpu.vector_store %arg4[%c0_5, %c0_6, %c0_7], %3 {strides = array<i32>} : memref<1x32x256xf32, #tpu.memory_space<vmem>>, vector<1x32x256xf32>,
    return
  }
  func.func @transform_0(%arg0: i32, %arg1: i32) -> (i32, i32, i32) {
    %c0_i32 = arith.constant 0 : i32
    %c0_i32_0 = arith.constant 0 : i32
    return %arg0, %c0_i32, %arg1 : i32, i32, i32
  }
  func.func @transform_1(%arg0: i32, %arg1: i32) -> (i32, i32, i32) {
    %c0_i32 = arith.constant 0 : i32
    %c0_i32_0 = arith.constant 0 : i32
    %c0_i32_1 = arith.constant 0 : i32
    return %arg0, %c0_i32, %c0_i32_0 : i32, i32, i32
  }
  func.func @transform_2(%arg0: i32, %arg1: i32) -> (i32, i32, i32) {
    %c0_i32 = arith.constant 0 : i32
    %c0_i32_0 = arith.constant 0 : i32
    return %arg0, %c0_i32, %arg1 : i32, i32, i32
  }
}

</mosaic_0001>

<bundles_post_ra>
// kernel: cra_layer.3
= control target key start
LH: loop header
LB: loop body
LE: loop exit
PB: predicated region body
PF: predicated region fallthrough
CT: control target
= control target key end

     0   :  { %s433_s9 = smov 0   ;;  %s435_s10 = smov 0   ;;  %s469_s0 = inlined_call_operand.vmem [shape: f32[2,32,256], index: 0, kind: input, shape index: {}]   ;;  %s470_s1 = inlined_call_operand.vmem [shape: f32[2,32,1], index: 1, kind: input, shape index: {}]   ;;  %s471_s2 = inlined_call_operand.vmem [shape: f32[2,32,256], index: 2, kind: output, shape index: {}]  }
   0x1   :  { %s437_s11 = smov 0  }
   0x2 LB: > { %s24_s12 = sadd.s32 1, %s411_s10  ;;  %p354_p0 = scmp.ge.s32.totalorder %s415_s11, 1  ;;  %s415_s11 = sphi %s437_s11, %s12_s11   ;;  %s411_s10 = sphi %s435_s10, %s473_s10   ;;  %s407_s9 = sphi %s433_s9, %s472_s9  }
   0x3   : > { %p26_p1 = scmp.ge.s32.totalorder %s24_s12, 2  ;;  %p143_p2 = scmp.lt.s32.totalorder %s415_s11, 3 }
   0x5   : > { %s475_s12 = smov (%p26_p1, %s24_s12), 0  ;;  %p144_p3 = pnand %p354_p0, %p143_p2 }
   0x6   : > { %p179_p4 = scmp.lt.s32.totalorder (!%p144_p3), %s407_s9, 1  ;;  %v417_v0 = vmov (!%p144_p3), 0  }
   0x7   : > { %147 = sbr.rel (%p144_p3) target bundleno = 154 (0x9a), region = 28  ;;  %392 = vset.pattern.permute.xlu1 (!%p144_p3), %v417_v0  ;;  %391 = vset.pattern.permute.xlu0 (!%p144_p3), %v417_v0 }
   0xe   : > { %s477_s9 = smov (!%p179_p4, %s407_s9), 1 }
   0xf   : > { %s364_s13 = sshll.u32 %s477_s9, 5  ;;  %s363_s17 = sshll.u32 %s477_s9, 6 }
  0x10   : > { %s192_s16 = scalar_lea.vmem %s470_s1, %s364_s13  ;;  %s186_s20 = scalar_lea.vmem %s469_s0, %s363_s17 }
  0x11   : > { %v213_v1 = vld [vmem:[%s192_s16 + $0x10] sm:$0xff]  ;;  %v211_v2 = vld [vmem:[%s192_s16] sm:$0xff]  ;;  %v214_v3 = vld [vmem:[%s192_s16 + $0x18] sm:$0xff]  ;;  %s201_s23 = scalar_lea.vmem %s471_s2, %s363_s17 }
  0x12   : > { %227 = vperm.xlu1 %392, %v213_v1   ;;  %217 = vperm.xlu0 %391, %v211_v2   ;;  %v212_v4 = vld [vmem:[%s192_s16 + $0x8] sm:$0xff]  ;;  %v207_v5 = vld [vmem:[%s186_s20 + $0x20] sm:$0xff]  ;;  %v209_v15 = vld [vmem:[%s186_s20 + $0x30] sm:$0xff] }
  0x13   : > { %v208_v6 = vld [vmem:[%s186_s20 + $0x28] sm:$0xff]  ;;  %v203_v7 = vld [vmem:[%s186_s20] sm:$0xff]  ;;  %v210_v16 = vld [vmem:[%s186_s20 + $0x38] sm:$0xff] }
  0x14   : > { %v204_v8 = vld [vmem:[%s186_s20 + $0x8] sm:$0xff]  ;;  %v205_v17 = vld [vmem:[%s186_s20 + $0x10] sm:$0xff]  ;;  %v206_v18 = vld [vmem:[%s186_s20 + $0x18] sm:$0xff] }
  0x16   : > { %232 = vperm.xlu1 %392, %v214_v3   ;;  %222 = vperm.xlu0 %391, %v212_v4  }
  0x91   : > { %v228_v9 = vpop.permute.xlu1 %227  ;;  %v218_v10 = vpop.permute.xlu0 %217 }
  0x92   : > { %v239_v11 = vmul.f32 %v228_v9, %v207_v5  ;;  %v240_v12 = vmul.f32 %v228_v9, %v208_v6  ;;  %v235_v13 = vmul.f32 %v218_v10, %v203_v7  ;;  %v236_v14 = vmul.f32 %v218_v10, %v204_v8 }
  0x94   : > { %247 = vst [vmem:[%s201_s23 + $0x20] sm:$0xff] %v239_v11  ;;  %248 = vst [vmem:[%s201_s23 + $0x28] sm:$0xff] %v240_v12 }
  0x95   : > { %243 = vst [vmem:[%s201_s23] sm:$0xff] %v235_v13  ;;  %244 = vst [vmem:[%s201_s23 + $0x8] sm:$0xff] %v236_v14  ;;  %v233_v19 = vpop.permute.xlu1 %232  ;;  %v223_v20 = vpop.permute.xlu0 %222 }
  0x96   : > { %v241_v21 = vmul.f32 %v233_v19, %v209_v15  ;;  %v242_v22 = vmul.f32 %v233_v19, %v210_v16  ;;  %v237_v23 = vmul.f32 %v223_v20, %v205_v17  ;;  %v238_v24 = vmul.f32 %v223_v20, %v206_v18 }
  0x98   : > { %249 = vst [vmem:[%s201_s23 + $0x30] sm:$0xff] %v241_v21  ;;  %250 = vst [vmem:[%s201_s23 + $0x38] sm:$0xff] %v242_v22 }
  0x99   : > { %245 = vst [vmem:[%s201_s23 + $0x10] sm:$0xff] %v237_v23  ;;  %246 = vst [vmem:[%s201_s23 + $0x18] sm:$0xff] %v238_v24 }
  0x9a PF: > { %s12_s11 = sadd.s32 1, %s415_s11   ;;  %s472_s9 = smov %s411_s10 }
  0x9b   : > { %p9_p5 = scmp.ge.s32.totalorder %s12_s11, 4   ;;  %s473_s10 = smov %s475_s12 }
  0x9d   :  { %11 = sbr.rel (!%p9_p5) target bundleno = 2 (0x2), region = 61 }

// kernel: cra_layer.2
= control target key start
LH: loop header
LB: loop body
LE: loop exit
PB: predicated region body
PF: predicated region fallthrough
CT: control target
= control target key end

     0   :  { %s329_s6 = smov 0   ;;  %s331_s7 = smov 0   ;;  %s384_s0 = inlined_call_operand.vmem [shape: f32[2,32,256], index: 0, kind: input, shape index: {}]   ;;  %s385_s1 = inlined_call_operand.vmem [shape: f32[2,32,1], index: 1, kind: output, shape index: {}]  }
   0x1   :  { %s333_s8 = smov 0  }
   0x2 LB: > { %s23_s9 = sadd.s32 1, %s312_s7  ;;  %p260_p0 = scmp.ge.s32.totalorder %s316_s8, 1  ;;  %s316_s8 = sphi %s333_s8, %s11_s8   ;;  %s312_s7 = sphi %s331_s7, %s387_s7   ;;  %s308_s6 = sphi %s329_s6, %s386_s6  }
   0x3   : > { %p25_p1 = scmp.ge.s32.totalorder %s23_s9, 2  ;;  %p106_p2 = scmp.lt.s32.totalorder %s316_s8, 3 }
   0x5   : > { %s389_s9 = smov (%p25_p1, %s23_s9), 0  ;;  %p107_p3 = pnand %p260_p0, %p106_p2 }
   0x6   : > { %p131_p4 = scmp.lt.s32.totalorder (!%p107_p3), %s308_s6, 1  ;;  %vm149_vm0 = vcmask (!%p107_p3), 7168   ;;  %v318_v3 = vmov (!%p107_p3), 0.0  }
   0x7   : > { %110 = sbr.rel (%p107_p3) target bundleno = 170 (0xaa), region = 24 }
   0xe   : > { %s391_s6 = smov (!%p131_p4, %s308_s6), 1 }
   0xf   : > { %s267_s10 = sshll.u32 %s391_s6, 6  ;;  %s268_s11 = sshll.u32 %s391_s6, 5 }
  0x10   : > { %s138_s14 = scalar_lea.vmem %s384_s0, %s267_s10  ;;  %s353_s17 = scalar_lea.vmem %s385_s1, %s268_s11 }
  0x11   : > { %v162_v0 = vld [vmem:[%s138_s14 + $0x20] sm:$0xff]  ;;  %v163_v1 = vld [vmem:[%s138_s14 + $0x28] sm:$0xff]  ;;  %152 = vst.msk [vmem:[%s353_s17 + $0x10] sm:$0xff] %vm149_vm0, %v318_v3  ;;  %150 = vst.msk [vmem:[%s353_s17] sm:$0xff] %vm149_vm0, %v318_v3 }
  0x12   : > { %v158_v2 = vld [vmem:[%s138_s14] sm:$0xff]  ;;  %151 = vst.msk [vmem:[%s353_s17 + $0x8] sm:$0xff] %vm149_vm0, %v318_v3  ;;  %153 = vst.msk [vmem:[%s353_s17 + $0x18] sm:$0xff] %vm149_vm0, %v318_v3  ;;  %v172_v4 = vadd.f32 %v163_v1, %v162_v0  ;;  %v159_v5 = vld [vmem:[%s138_s14 + $0x8] sm:$0xff] }
  0x13   : > { %v164_v6 = vld [vmem:[%s138_s14 + $0x30] sm:$0xff]  ;;  %v165_v7 = vld [vmem:[%s138_s14 + $0x38] sm:$0xff]  ;;  %v166_v8 = vadd.f32 %v159_v5, %v158_v2 }
  0x14   : > { %v160_v9 = vld [vmem:[%s138_s14 + $0x10] sm:$0xff]  ;;  %v161_v10 = vld [vmem:[%s138_s14 + $0x18] sm:$0xff]  ;;  %173 = vadd.xlane.f32.xlu1 %v172_v4  ;;  %v175_v11 = vadd.f32 %v165_v7, %v164_v6 }
  0x15   : > { %167 = vadd.xlane.f32.xlu0 %v166_v8  ;;  %v169_v12 = vadd.f32 %v161_v10, %v160_v9 }
  0x18   : > { %176 = vadd.xlane.f32.xlu1 %v175_v11  ;;  %v156_v13 = vld [vmem:[%s353_s17 + $0x10] sm:$0xff]  ;;  %v154_v14 = vld [vmem:[%s353_s17] sm:$0xff] }
  0x19   : > { %170 = vadd.xlane.f32.xlu0 %v169_v12  ;;  %v157_v19 = vld [vmem:[%s353_s17 + $0x18] sm:$0xff]  ;;  %v155_v20 = vld [vmem:[%s353_s17 + $0x8] sm:$0xff] }
  0xa1   : > { %v174_v15 = vpop.xlane.xlu1 %173 }
  0xa2   : > { %v180_v16 = vadd.f32 %v174_v15, %v156_v13  ;;  %v168_v17 = vpop.xlane.xlu0 %167 }
  0xa3   : > { %v178_v18 = vadd.f32 %v168_v17, %v154_v14 }
  0xa4   : > { %185 = vst.msk [vmem:[%s353_s17 + $0x10] sm:$0xff] %vm149_vm0, %v180_v16 }
  0xa5   : > { %183 = vst.msk [vmem:[%s353_s17] sm:$0xff] %vm149_vm0, %v178_v18  ;;  %v177_v21 = vpop.xlane.xlu1 %176 }
  0xa6   : > { %v181_v22 = vadd.f32 %v177_v21, %v157_v19  ;;  %v171_v23 = vpop.xlane.xlu0 %170 }
  0xa7   : > { %v179_v24 = vadd.f32 %v171_v23, %v155_v20 }
  0xa8   : > { %186 = vst.msk [vmem:[%s353_s17 + $0x18] sm:$0xff] %vm149_vm0, %v181_v22 }
  0xa9   : > { %184 = vst.msk [vmem:[%s353_s17 + $0x8] sm:$0xff] %vm149_vm0, %v179_v24 }
  0xaa PF: > { %s11_s8 = sadd.s32 1, %s316_s8   ;;  %s386_s6 = smov %s312_s7 }
  0xab   : > { %p8_p5 = scmp.ge.s32.totalorder %s11_s8, 4   ;;  %s387_s7 = smov %s389_s9 }
  0xad   :  { %10 = sbr.rel (!%p8_p5) target bundleno = 2 (0x2), region = 58 }

</bundles_post_ra>
